<compile_context>
chip_gen: v5e
topology: v5e:2x2
jax: 0.10.0
libtpu: 0.0.40
codegen_flags: <defaults>
</compile_context>

<pallas_src>
import functools

import jax
import jax.numpy as jnp
from jax.experimental import pallas as pl
from jax.experimental.pallas import tpu as pltpu


def graph_cluster_kernel(adj_ref, x_ref, w1_ref, b1_ref, w2_ref, b2_ref,
                         wg_ref, wa_ref, out_ref, *, num_layers):
    Bb, N, F_in = x_ref.shape
    H = w2_ref.shape[1]

    # --- fc1 -> sigmoid, fc2 -> sigmoid, batch block folded into the MXU M
    # dimension (Bb*N rows).  bf16 operands, f32 accumulation.
    # NOTE: the (Bb, N, F) -> (Bb*N, F) reshape is free only when N % 8 == 0.
    x = x_ref[...].astype(jnp.bfloat16).reshape(Bb * N, F_in)
    h = jax.nn.sigmoid(
        jnp.dot(x, w1_ref[...].astype(jnp.bfloat16),
                preferred_element_type=jnp.float32) + b1_ref[...])
    h = jax.nn.sigmoid(
        jnp.dot(h.astype(jnp.bfloat16), w2_ref[...].astype(jnp.bfloat16),
                preferred_element_type=jnp.float32) + b2_ref[...])
    h = h.reshape(Bb, N, H)

    # adj arrives as int8 (0/1 exact); cast once to bf16 for the MXU.
    adj = adj_ref[...].astype(jnp.bfloat16)          # (Bb, N, N)

    # D = 1 / sum(adj + I, dim=-1) == 1 / (rowsum(adj) + 1).
    # Row-sum as a thin bf16 MXU matmul with f32 accumulation: exact for any N
    # and avoids materializing an (Bb, N, N) f32 transient.
    ones_rhs = jnp.ones((N, 8), jnp.bfloat16)
    deg = jnp.einsum('bij,jo->bio', adj, ones_rhs,
                     preferred_element_type=jnp.float32)[..., :1]   # (Bb, N, 1)
    deg_inv = pl.reciprocal(deg + 1.0, approx=False)

    def propagate(h_in, w):
        # Feature transform (bf16 operands, f32 accumulation) ...
        xw = jnp.dot(h_in.reshape(Bb * N, -1).astype(jnp.bfloat16),
                     w.astype(jnp.bfloat16),
                     preferred_element_type=jnp.float32)
        xw = xw.reshape(Bb, N, -1)
        # ... then the dominant adjacency matmul on the bf16 MXU path with f32
        # accumulation.  The degree normalization is a post-matmul row scale:
        # D * (A @ XW) == (D*A) @ XW, so the normalized N x N adjacency is
        # never materialized.
        ax = jnp.einsum('bij,bjk->bik', adj, xw.astype(jnp.bfloat16),
                        preferred_element_type=jnp.float32)
        return jnp.tanh(deg_inv * ax)

    # GraphConvSparse base layers, then the assignment layer.
    for layer in range(num_layers):
        h = propagate(h, wg_ref[layer])
    out = propagate(h, wa_ref[...])

    out_ref[...] = out.astype(out_ref.dtype)


def _vmem_capacity_bytes():
    """Generation-aware VMEM capacity (v5e/v6e: 128 MiB, v7x: 64 MiB/TC)."""
    try:
        cap = getattr(pltpu.get_tpu_info(), "vmem_capacity_bytes", None)
        if cap:
            return int(cap)
    except Exception:
        pass
    return 64 * 1024 * 1024   # conservative fallback (v7x per-core VMEM)


def _per_graph_vmem_bytes(N, F_in, x_itemsize, H, Z):
    """Rough per-graph VMEM footprint for the block_b heuristic."""
    adj_io = 2 * N * N                        # int8 double-buffer
    adj_k = 2 * N * N                         # in-kernel bf16 copy
    x_io = 2 * N * F_in * x_itemsize          # X double-buffer
    out_io = 2 * N * Z * 2                    # bf16 output double-buffer
    temps = 4 * N * (128 + 2 * max(H, Z) + 1)  # h / xw / ax / deg_inv (f32)
    return adj_io + adj_k + x_io + out_io + temps


def graph_cluster_forward(adj, X, w1, b1, w2, b2, wg, wa, *, block_b=None):
    B, N, _ = adj.shape
    F_in = X.shape[-1]
    L, H, _ = wg.shape
    Z = wa.shape[-1]

    vmem_cap = _vmem_capacity_bytes()
    x_itemsize = jnp.dtype(X.dtype).itemsize
    fixed_bytes = 2 * 4 * (F_in * 128 + 128 + 128 * H + H + L * H * H + H * Z)

    # block_b: largest batch block that (a) fits a ~75% VMEM budget and
    # (b) still leaves >= ~8 grid steps so the software pipeline can actually
    # hide HBM traffic (and both v7x TensorCores get more than one step).
    if block_b is None:
        budget = int(vmem_cap * 0.75) - fixed_bytes
        per_graph = _per_graph_vmem_bytes(N, F_in, x_itemsize, H, Z)
        fit_b = max(1, budget // per_graph)
        target_b = max(1, B // 8)
        block_b = int(max(1, min(fit_b, target_b)))
    while B % block_b:
        block_b -= 1
    num_steps = B // block_b

    # Generation-aware scoped-VMEM limit (v6e/v5e ~108 MiB, v7x ~54 MiB).
    vmem_limit = max(32 * 1024 * 1024, int(vmem_cap * 0.85))

    # adj is 0/1 -> exact in int8; halves the dominant HBM read stream vs bf16
    # and quarters it vs f32.  Cast to bf16 happens once inside the kernel.
    adj_i8 = adj.astype(jnp.int8)
    b1 = b1.reshape(1, -1).astype(jnp.float32)
    b2 = b2.reshape(1, -1).astype(jnp.float32)

    kernel = functools.partial(graph_cluster_kernel, num_layers=L)
    out = pl.pallas_call(
        kernel,
        # bf16 output, no 128-lane padding: for small z_dim the padded f32
        # stream would dominate HBM writeback.
        out_shape=jax.ShapeDtypeStruct((B, N, Z), jnp.bfloat16),
        grid_spec=pltpu.PrefetchScalarGridSpec(
            num_scalar_prefetch=0,
            grid=(num_steps,),
            in_specs=[
                pl.BlockSpec((block_b, N, N), lambda b: (b, 0, 0)),     # adj (int8)
                pl.BlockSpec((block_b, N, F_in), lambda b: (b, 0, 0)),  # X (native dtype)
                pl.BlockSpec((F_in, 128), lambda b: (0, 0)),            # fc1 weight
                pl.BlockSpec((1, 128), lambda b: (0, 0)),               # fc1 bias
                pl.BlockSpec((128, H), lambda b: (0, 0)),               # fc2 weight
                pl.BlockSpec((1, H), lambda b: (0, 0)),                 # fc2 bias
                pl.BlockSpec((L, H, H), lambda b: (0, 0, 0)),           # stacked GCN weights
                pl.BlockSpec((H, Z), lambda b: (0, 0)),                 # assignment weight
            ],
            out_specs=pl.BlockSpec((block_b, N, Z), lambda b: (b, 0, 0)),
        ),
        compiler_params=pltpu.CompilerParams(
            dimension_semantics=("parallel",),
            vmem_limit_bytes=vmem_limit,
        ),
    )(adj_i8, X, w1, b1, w2, b2, wg, wa)

    # TODO(synk): for very large N on v7x (N >~ 2.5k at block_b=1), row-tile adj
    # with grid=(num_batch_blocks, N//tm), caching h in VMEM scratch across the
    # row axis marked "arbitrary".
    # TODO(synk): on v6e/v5e, consider pipeline_mode=pl.Buffered(3) on the adj
    # in_spec (128 MiB VMEM leaves room) to hide more of the dominant DMA.
    return out.astype(jnp.float32)


def glorot_init(key, in_dim, out_dim):
    r = jnp.sqrt(6.0 / (in_dim + out_dim))
    return jax.random.uniform(key, (in_dim, out_dim), jnp.float32, -r, r)


def reference_forward(adj, X, w1, b1, w2, b2, wg, wa):
    """Pure-JAX f32 reference of the PyTorch forward semantics."""
    h = jax.nn.sigmoid(X @ w1 + b1)
    h = jax.nn.sigmoid(h @ w2 + b2)
    deg_inv = 1.0 / (jnp.sum(adj, axis=2) + 1.0)          # D = 1/sum(adj + I, dim=2)
    adj_n = deg_inv[:, :, None] * adj
    for layer in range(wg.shape[0]):
        h = jnp.tanh(adj_n @ (h @ wg[layer]))
    return jnp.tanh(adj_n @ (h @ wa))


if __name__ == "__main__":
    # Small shapes consistent with the module.
    B, N = 2, 16
    num_layers, input_dim, hidden_dim, z_dim = 2, 8, 32, 8

    key = jax.random.PRNGKey(0)
    k_adj, k_x, k1, k2, k3, k4, k5, k6 = jax.random.split(key, 8)

    # Binary symmetric adjacency (no self loops), float node features.
    a = (jax.random.uniform(k_adj, (B, N, N)) > 0.7).astype(jnp.float32)
    adj = jnp.maximum(a, jnp.transpose(a, (0, 2, 1)))
    adj = adj * (1.0 - jnp.eye(N)[None])
    X = jax.random.normal(k_x, (B, N, input_dim), jnp.float32)

    # Deterministic parameter init (shapes from __init__; stored as [in, out]).
    w1 = jax.random.uniform(k1, (input_dim, 128), jnp.float32,
                            -1.0 / jnp.sqrt(input_dim), 1.0 / jnp.sqrt(input_dim))
    b1 = jax.random.uniform(k2, (1, 128), jnp.float32,
                            -1.0 / jnp.sqrt(input_dim), 1.0 / jnp.sqrt(input_dim))
    w2 = jax.random.uniform(k3, (128, hidden_dim), jnp.float32,
                            -1.0 / jnp.sqrt(128.0), 1.0 / jnp.sqrt(128.0))
    b2 = jax.random.uniform(k4, (1, hidden_dim), jnp.float32,
                            -1.0 / jnp.sqrt(128.0), 1.0 / jnp.sqrt(128.0))
    wg_keys = jax.random.split(k5, num_layers)
    wg = jnp.stack([glorot_init(wg_keys[i], hidden_dim, hidden_dim)
                    for i in range(num_layers)], axis=0)
    wa = glorot_init(k6, hidden_dim, z_dim)

    out = graph_cluster_forward(adj, X, w1, b1, w2, b2, wg, wa)
    out = jax.block_until_ready(out)

    ref = reference_forward(adj, X, w1, b1.reshape(-1), w2, b2.reshape(-1), wg, wa)
    assert out.shape == (B, N, z_dim)
    # Tolerance vs the pure-f32 reference: feature-transform operands are bf16
    # (adj is exact int8->bf16, accumulation f32) and the output is stored in
    # bf16, so allow ~2e-2 on tanh outputs in (-1, 1).
    assert jnp.allclose(out, ref, atol=2e-2, rtol=2e-2), "mismatch vs reference"

    print("KERNEL_OK")
</pallas_src>

<mosaic_0001>
module attributes {stable_mosaic.version = 11 : i64} {
  func.func @graph_cluster_kernel(%arg0: i32, %arg1: memref<1x16x16xi8, #tpu.memory_space<vmem>>, %arg2: memref<1x16x8xf32, #tpu.memory_space<vmem>>, %arg3: memref<8x128xf32, #tpu.memory_space<vmem>>, %arg4: memref<1x128xf32, #tpu.memory_space<vmem>>, %arg5: memref<128x32xf32, #tpu.memory_space<vmem>>, %arg6: memref<1x32xf32, #tpu.memory_space<vmem>>, %arg7: memref<2x32x32xf32, #tpu.memory_space<vmem>>, %arg8: memref<32x8xf32, #tpu.memory_space<vmem>>, %arg9: memref<1x16x8xbf16, #tpu.memory_space<vmem>>) attributes {dimension_semantics = [#tpu.dimension_semantics<parallel>], iteration_bounds = array<i64: 2>, scalar_prefetch = 0 : i64, scratch_operands = 0 : i64, tpu.core_type = #tpu.core_type<tc>, window_params = [{transform_indices = @transform_0, window_bounds = array<i64: 1, 16, 16>}, {transform_indices = @transform_1, window_bounds = array<i64: 1, 16, 8>}, {pipeline_mode = #tpu.pipeline_mode<synchronous>, transform_indices = @transform_2, window_bounds = array<i64: 8, 128>}, {pipeline_mode = #tpu.pipeline_mode<synchronous>, transform_indices = @transform_3, window_bounds = array<i64: 1, 128>}, {pipeline_mode = #tpu.pipeline_mode<synchronous>, transform_indices = @transform_4, window_bounds = array<i64: 128, 32>}, {pipeline_mode = #tpu.pipeline_mode<synchronous>, transform_indices = @transform_5, window_bounds = array<i64: 1, 32>}, {pipeline_mode = #tpu.pipeline_mode<synchronous>, transform_indices = @transform_6, window_bounds = array<i64: 2, 32, 32>}, {pipeline_mode = #tpu.pipeline_mode<synchronous>, transform_indices = @transform_7, window_bounds = array<i64: 32, 8>}, {transform_indices = @transform_8, window_bounds = array<i64: 1, 16, 8>}]} {
    %c0 = arith.constant 0 : index
    %c0_0 = arith.constant 0 : index
    %c0_1 = arith.constant 0 : index
    %0 = vector.load %arg2[%c0, %c0_0, %c0_1] : memref<1x16x8xf32, #tpu.memory_space<vmem>>, vector<1x16x8xf32>
    %1 = arith.truncf %0 : vector<1x16x8xf32> to vector<1x16x8xbf16>
    %2 = vector.shape_cast %1 : vector<1x16x8xbf16> to vector<16x8xbf16>
    %c0_2 = arith.constant 0 : index
    %c0_3 = arith.constant 0 : index
    %3 = vector.load %arg3[%c0_2, %c0_3] : memref<8x128xf32, #tpu.memory_space<vmem>>, vector<8x128xf32>
    %4 = arith.truncf %3 : vector<8x128xf32> to vector<8x128xbf16>
    %cst = arith.constant dense<0.000000e+00> : vector<16x128xf32>
    %5 = tpu.matmul %2, %4, %cst {dimension_numbers = #tpu.dot_dimension_numbers<[1], [0], [0], [1], [0, 0, 1, 1], [], []>} : vector<16x8xbf16>, vector<8x128xbf16>, vector<16x128xf32> -> vector<16x128xf32>
    %c0_4 = arith.constant 0 : index
    %c0_5 = arith.constant 0 : index
    %6 = vector.load %arg4[%c0_4, %c0_5] : memref<1x128xf32, #tpu.memory_space<vmem>>, vector<1x128xf32>
    %7 = vector.broadcast %6 : vector<1x128xf32> to vector<16x128xf32>
    %8 = arith.addf %5, %7 : vector<16x128xf32>
    %9 = arith.negf %8 : vector<16x128xf32>
    %10 = math.exp %9 : vector<16x128xf32>
    %cst_6 = arith.constant 1.000000e+00 : f32
    %11 = vector.broadcast %cst_6 : f32 to vector<16x128xf32>
    %12 = arith.addf %11, %10 : vector<16x128xf32>
    %13 = arith.divf %11, %12 : vector<16x128xf32>
    %14 = arith.truncf %13 : vector<16x128xf32> to vector<16x128xbf16>
    %c0_7 = arith.constant 0 : index
    %c0_8 = arith.constant 0 : index
    %15 = vector.load %arg5[%c0_7, %c0_8] : memref<128x32xf32, #tpu.memory_space<vmem>>, vector<128x32xf32>
    %16 = arith.truncf %15 : vector<128x32xf32> to vector<128x32xbf16>
    %cst_9 = arith.constant dense<0.000000e+00> : vector<16x32xf32>
    %17 = tpu.matmul %14, %16, %cst_9 {dimension_numbers = #tpu.dot_dimension_numbers<[1], [0], [0], [1], [0, 0, 1, 1], [], []>} : vector<16x128xbf16>, vector<128x32xbf16>, vector<16x32xf32> -> vector<16x32xf32>
    %c0_10 = arith.constant 0 : index
    %c0_11 = arith.constant 0 : index
    %18 = vector.load %arg6[%c0_10, %c0_11] : memref<1x32xf32, #tpu.memory_space<vmem>>, vector<1x32xf32>
    %19 = vector.broadcast %18 : vector<1x32xf32> to vector<16x32xf32>
    %20 = arith.addf %17, %19 : vector<16x32xf32>
    %21 = arith.negf %20 : vector<16x32xf32>
    %22 = math.exp %21 : vector<16x32xf32>
    %cst_12 = arith.constant 1.000000e+00 : f32
    %23 = vector.broadcast %cst_12 : f32 to vector<16x32xf32>
    %24 = arith.addf %23, %22 : vector<16x32xf32>
    %25 = arith.divf %23, %24 : vector<16x32xf32>
    %26 = vector.shape_cast %25 : vector<16x32xf32> to vector<1x16x32xf32>
    %c0_13 = arith.constant 0 : index
    %c0_14 = arith.constant 0 : index
    %c0_15 = arith.constant 0 : index
    %27 = vector.load %arg1[%c0_13, %c0_14, %c0_15] : memref<1x16x16xi8, #tpu.memory_space<vmem>>, vector<1x16x16xi8>
    %28 = arith.sitofp %27 : vector<1x16x16xi8> to vector<1x16x16xbf16>
    %cst_16 = arith.constant 1.000000e+00 : bf16
    %29 = vector.broadcast %cst_16 : bf16 to vector<16x8xbf16>
    "tpu.trace_start"() <{level = 10 : i32, message = "bij,jo->bio"}> : () -> ()
    %cst_17 = arith.constant dense<0.000000e+00> : vector<1x16x8xf32>
    %30 = tpu.matmul %28, %29, %cst_17 {dimension_numbers = #tpu.dot_dimension_numbers<[2], [0], [0, 1], [1], [0, 0, 0, 1, 1, 1], [], []>} : vector<1x16x16xbf16>, vector<16x8xbf16>, vector<1x16x8xf32> -> vector<1x16x8xf32>
    "tpu.trace_stop"() : () -> ()
    %31 = vector.extract_strided_slice %30 {offsets = [0, 0, 0], sizes = [1, 16, 1], strides = [1, 1, 1]} : vector<1x16x8xf32> to vector<1x16x1xf32>
    %cst_18 = arith.constant 1.000000e+00 : f32
    %32 = vector.broadcast %cst_18 : f32 to vector<1x16x1xf32>
    %33 = arith.addf %31, %32 : vector<1x16x1xf32>
    %34 = tpu.reciprocal %33 : vector<1x16x1xf32> -> vector<1x16x1xf32>
    %c0_19 = arith.constant 0 : index
    %c0_20 = arith.constant 0 : index
    %c0_21 = arith.constant 0 : index
    %35 = vector.load %arg7[%c0_19, %c0_20, %c0_21] : memref<2x32x32xf32, #tpu.memory_space<vmem>>, vector<1x32x32xf32>
    %36 = vector.shape_cast %35 : vector<1x32x32xf32> to vector<32x32xf32>
    %37 = vector.shape_cast %26 : vector<1x16x32xf32> to vector<16x32xf32>
    %38 = arith.truncf %37 : vector<16x32xf32> to vector<16x32xbf16>
    %39 = arith.truncf %36 : vector<32x32xf32> to vector<32x32xbf16>
    %cst_22 = arith.constant dense<0.000000e+00> : vector<16x32xf32>
    %40 = tpu.matmul %38, %39, %cst_22 {dimension_numbers = #tpu.dot_dimension_numbers<[1], [0], [0], [1], [0, 0, 1, 1], [], []>} : vector<16x32xbf16>, vector<32x32xbf16>, vector<16x32xf32> -> vector<16x32xf32>
    %41 = vector.shape_cast %40 : vector<16x32xf32> to vector<1x16x32xf32>
    %42 = arith.truncf %41 : vector<1x16x32xf32> to vector<1x16x32xbf16>
    "tpu.trace_start"() <{level = 10 : i32, message = "bij,bjk->bik"}> : () -> ()
    %cst_23 = arith.constant dense<0.000000e+00> : vector<1x16x32xf32>
    %43 = tpu.matmul %28, %42, %cst_23 {dimension_numbers = #tpu.dot_dimension_numbers<[2], [1], [1], [2], [0, 0, 0, 1, 1, 2], [0], [0]>} : vector<1x16x16xbf16>, vector<1x16x32xbf16>, vector<1x16x32xf32> -> vector<1x16x32xf32>
    "tpu.trace_stop"() : () -> ()
    %44 = vector.broadcast %34 : vector<1x16x1xf32> to vector<1x16x32xf32>
    %45 = arith.mulf %44, %43 : vector<1x16x32xf32>
    %46 = math.tanh %45 : vector<1x16x32xf32>
    %c1 = arith.constant 1 : index
    %c0_24 = arith.constant 0 : index
    %c0_25 = arith.constant 0 : index
    %47 = vector.load %arg7[%c1, %c0_24, %c0_25] : memref<2x32x32xf32, #tpu.memory_space<vmem>>, vector<1x32x32xf32>
    %48 = vector.shape_cast %47 : vector<1x32x32xf32> to vector<32x32xf32>
    %49 = vector.shape_cast %46 : vector<1x16x32xf32> to vector<16x32xf32>
    %50 = arith.truncf %49 : vector<16x32xf32> to vector<16x32xbf16>
    %51 = arith.truncf %48 : vector<32x32xf32> to vector<32x32xbf16>
    %cst_26 = arith.constant dense<0.000000e+00> : vector<16x32xf32>
    %52 = tpu.matmul %50, %51, %cst_26 {dimension_numbers = #tpu.dot_dimension_numbers<[1], [0], [0], [1], [0, 0, 1, 1], [], []>} : vector<16x32xbf16>, vector<32x32xbf16>, vector<16x32xf32> -> vector<16x32xf32>
    %53 = vector.shape_cast %52 : vector<16x32xf32> to vector<1x16x32xf32>
    %54 = arith.truncf %53 : vector<1x16x32xf32> to vector<1x16x32xbf16>
    "tpu.trace_start"() <{level = 10 : i32, message = "bij,bjk->bik"}> : () -> ()
    %cst_27 = arith.constant dense<0.000000e+00> : vector<1x16x32xf32>
    %55 = tpu.matmul %28, %54, %cst_27 {dimension_numbers = #tpu.dot_dimension_numbers<[2], [1], [1], [2], [0, 0, 0, 1, 1, 2], [0], [0]>} : vector<1x16x16xbf16>, vector<1x16x32xbf16>, vector<1x16x32xf32> -> vector<1x16x32xf32>
    "tpu.trace_stop"() : () -> ()
    %56 = vector.broadcast %34 : vector<1x16x1xf32> to vector<1x16x32xf32>
    %57 = arith.mulf %56, %55 : vector<1x16x32xf32>
    %58 = math.tanh %57 : vector<1x16x32xf32>
    %c0_28 = arith.constant 0 : index
    %c0_29 = arith.constant 0 : index
    %59 = vector.load %arg8[%c0_28, %c0_29] : memref<32x8xf32, #tpu.memory_space<vmem>>, vector<32x8xf32>
    %60 = vector.shape_cast %58 : vector<1x16x32xf32> to vector<16x32xf32>
    %61 = arith.truncf %60 : vector<16x32xf32> to vector<16x32xbf16>
    %62 = arith.truncf %59 : vector<32x8xf32> to vector<32x8xbf16>
    %cst_30 = arith.constant dense<0.000000e+00> : vector<16x8xf32>
    %63 = tpu.matmul %61, %62, %cst_30 {dimension_numbers = #tpu.dot_dimension_numbers<[1], [0], [0], [1], [0, 0, 1, 1], [], []>} : vector<16x32xbf16>, vector<32x8xbf16>, vector<16x8xf32> -> vector<16x8xf32>
    %64 = vector.shape_cast %63 : vector<16x8xf32> to vector<1x16x8xf32>
    %65 = arith.truncf %64 : vector<1x16x8xf32> to vector<1x16x8xbf16>
    "tpu.trace_start"() <{level = 10 : i32, message = "bij,bjk->bik"}> : () -> ()
    %cst_31 = arith.constant dense<0.000000e+00> : vector<1x16x8xf32>
    %66 = tpu.matmul %28, %65, %cst_31 {dimension_numbers = #tpu.dot_dimension_numbers<[2], [1], [1], [2], [0, 0, 0, 1, 1, 2], [0], [0]>} : vector<1x16x16xbf16>, vector<1x16x8xbf16>, vector<1x16x8xf32> -> vector<1x16x8xf32>
    "tpu.trace_stop"() : () -> ()
    %67 = vector.broadcast %34 : vector<1x16x1xf32> to vector<1x16x8xf32>
    %68 = arith.mulf %67, %66 : vector<1x16x8xf32>
    %69 = math.tanh %68 : vector<1x16x8xf32>
    %70 = arith.truncf %69 : vector<1x16x8xf32> to vector<1x16x8xbf16>
    %c0_32 = arith.constant 0 : index
    %c0_33 = arith.constant 0 : index
    %c0_34 = arith.constant 0 : index
    %71 = vector.load %arg9[%c0_32, %c0_33, %c0_34] : memref<1x16x8xbf16, #tpu.memory_space<vmem>>, vector<1x16x8xbf16>
    tpu.vector_store %arg9[%c0_32, %c0_33, %c0_34], %70 {strides = array<i32>} : memref<1x16x8xbf16, #tpu.memory_space<vmem>>, vector<1x16x8xbf16>,
    return
  }
  func.func @transform_0(%arg0: i32) -> (i32, i32, i32) {
    %c0_i32 = arith.constant 0 : i32
    %c0_i32_0 = arith.constant 0 : i32
    %c0_i32_1 = arith.constant 0 : i32
    return %arg0, %c0_i32, %c0_i32_0 : i32, i32, i32
  }
  func.func @transform_1(%arg0: i32) -> (i32, i32, i32) {
    %c0_i32 = arith.constant 0 : i32
    %c0_i32_0 = arith.constant 0 : i32
    %c0_i32_1 = arith.constant 0 : i32
    return %arg0, %c0_i32, %c0_i32_0 : i32, i32, i32
  }
  func.func @transform_2(%arg0: i32) -> (i32, i32) {
    %c0_i32 = arith.constant 0 : i32
    %c0_i32_0 = arith.constant 0 : i32
    %c0_i32_1 = arith.constant 0 : i32
    return %c0_i32, %c0_i32_0 : i32, i32
  }
  func.func @transform_3(%arg0: i32) -> (i32, i32) {
    %c0_i32 = arith.constant 0 : i32
    %c0_i32_0 = arith.constant 0 : i32
    %c0_i32_1 = arith.constant 0 : i32
    return %c0_i32, %c0_i32_0 : i32, i32
  }
  func.func @transform_4(%arg0: i32) -> (i32, i32) {
    %c0_i32 = arith.constant 0 : i32
    %c0_i32_0 = arith.constant 0 : i32
    %c0_i32_1 = arith.constant 0 : i32
    return %c0_i32, %c0_i32_0 : i32, i32
  }
  func.func @transform_5(%arg0: i32) -> (i32, i32) {
    %c0_i32 = arith.constant 0 : i32
    %c0_i32_0 = arith.constant 0 : i32
    %c0_i32_1 = arith.constant 0 : i32
    return %c0_i32, %c0_i32_0 : i32, i32
  }
  func.func @transform_6(%arg0: i32) -> (i32, i32, i32) {
    %c0_i32 = arith.constant 0 : i32
    %c0_i32_0 = arith.constant 0 : i32
    %c0_i32_1 = arith.constant 0 : i32
    %c0_i32_2 = arith.constant 0 : i32
    return %c0_i32, %c0_i32_0, %c0_i32_1 : i32, i32, i32
  }
  func.func @transform_7(%arg0: i32) -> (i32, i32) {
    %c0_i32 = arith.constant 0 : i32
    %c0_i32_0 = arith.constant 0 : i32
    %c0_i32_1 = arith.constant 0 : i32
    return %c0_i32, %c0_i32_0 : i32, i32
  }
  func.func @transform_8(%arg0: i32) -> (i32, i32, i32) {
    %c0_i32 = arith.constant 0 : i32
    %c0_i32_0 = arith.constant 0 : i32
    %c0_i32_1 = arith.constant 0 : i32
    return %arg0, %c0_i32, %c0_i32_0 : i32, i32, i32
  }
}

</mosaic_0001>

<bundles_post_ra>
// kernel: tpu_custom_call.1
= control target key start
LH: loop header
LB: loop body
LE: loop exit
PB: predicated region body
PF: predicated region fallthrough
CT: control target
= control target key end

     0   :  { %s915_s27 = smov 0   ;;  %s1046_s0 = inlined_call_operand.vmem [shape: s8[2,16,16], index: 0, kind: input, shape index: {}]   ;;  %s1047_s1 = inlined_call_operand.vmem [shape: f32[2,16,8], index: 1, kind: input, shape index: {}]   ;;  %s1048_s2 = inlined_call_operand.vmem [shape: f32[8,128], index: 2, kind: input, shape index: {}]   ;;  %s1049_s3 = inlined_call_operand.vmem [shape: f32[1,128], index: 3, kind: input, shape index: {}]   ;;  %s1050_s4 = inlined_call_operand.vmem [shape: f32[128,32], index: 4, kind: input, shape index: {}]   ;;  %s1051_s5 = inlined_call_operand.vmem [shape: f32[1,32], index: 5, kind: input, shape index: {}]   ;;  %s1052_s6 = inlined_call_operand.vmem [shape: f32[2,32,32], index: 6, kind: input, shape index: {}]   ;;  %s1053_s7 = inlined_call_operand.vmem [shape: f32[32,8], index: 7, kind: input, shape index: {}]   ;;  %s1054_s8 = inlined_call_operand.vmem [shape: bf16[2,16,8], index: 8, kind: output, shape index: {}]  }
   0x1 LB: > { %s779_s28 = sadd.s32 4294967295, %s866_s27   ;;  %p783_p0 = scmp.ge.s32.totalorder %s866_s27, 1  ;;  %s866_s27 = sphi %s915_s27, %s18_s27  }
   0x2   : > { %p272_p1 = scmp.lt.s32.totalorder %s866_s27, 3 }
   0x4   : > { %p273_p2 = pnand %p783_p0, %p272_p1 }
   0x5   : > { %p311_p3 = scmp.lt.s32.totalorder (!%p273_p2), %s779_s28, 1 }
   0x6   : > { %276 = sbr.rel (%p273_p2) target bundleno = 1242 (0x4da), region = 52 }
   0xb   : > { %v332_v0 = vld [vmem:[%s1048_s2] sm:$0xff]  ;;  %vm347_vm0 = vcmask 1043456   ;;  %s1056_s28 = smov (!%p311_p3, %s779_s28), 1  ;;  %vm343_vm1 = vcmask 64512   ;;  %v418_v10 = vld [vmem:[%s1050_s4 + $0x70] sm:$0xff]  ;;  %v419_v11 = vld [vmem:[%s1050_s4 + $0x78] sm:$0xff] }
   0xc   : > { %v333_v1 = vpack.c.bf16 %v332_v0, %v332_v0  ;;  %s809_s9 = sshll.u32 %s1056_s28, 4  ;;  %v427_v12 = vpack.c.bf16 %v419_v11, %v418_v10  ;;  %v416_v13 = vld [vmem:[%s1050_s4 + $0x60] sm:$0xff]  ;;  %v417_v14 = vld [vmem:[%s1050_s4 + $0x68] sm:$0xff]  ;;  %v414_v16 = vld [vmem:[%s1050_s4 + $0x50] sm:$0xff]  ;;  %s808_s29 = sshll.u32 %s1056_s28, 2  ;;  %vm497_vm10 = vcmask 130048  }
   0xd   : > { %s320_s12 = scalar_lea.vmem %s1047_s1, %s809_s9  ;;  %v426_v15 = vpack.c.bf16 %v417_v14, %v416_v13  ;;  %v415_v17 = vld [vmem:[%s1050_s4 + $0x58] sm:$0xff]  ;;  %v412_v19 = vld [vmem:[%s1050_s4 + $0x40] sm:$0xff]  ;;  %v413_v20 = vld [vmem:[%s1050_s4 + $0x48] sm:$0xff]  ;;  %s315_s10 = scalar_lea.vmem %s1046_s0, %s808_s29  ;;  %v868_v11 = vmov 1065369472  }
   0xe   : > { %v349_v2 = vsel %vm347_vm0, %v333_v1, 0  ;;  %v328_v3 = vld [vmem:[%s320_s12] sm:$0xff]  ;;  %v329_v4 = vld [vmem:[%s320_s12 + $0x8] sm:$0xff]  ;;  %432 = vmatpush.bf16.msra.mxu1 %v427_v12  ;;  %v425_v18 = vpack.c.bf16 %v415_v17, %v414_v16  ;;  %v424_v21 = vpack.c.bf16 %v413_v20, %v412_v19  ;;  %v410_v22 = vld [vmem:[%s1050_s4 + $0x30] sm:$0xff]  ;;  %508 = vmatpush.bf16.msra.mxu2 %v868_v11  ;;  %s810_s17 = sshll.u32 %s1056_s28, 3 }
   0xf   : > { %358 = vmatpush.bf16.msra.mxu0 %v349_v2  ;;  %v330_v5 = vpack.c.bf16 %v328_v3, %v328_v3  ;;  %v331_v6 = vpack.c.bf16 %v329_v4, %v329_v4  ;;  %v411_v23 = vld [vmem:[%s1050_s4 + $0x38] sm:$0xff]  ;;  %v408_v25 = vld [vmem:[%s1050_s4 + $0x20] sm:$0xff]  ;;  %v409_v26 = vld [vmem:[%s1050_s4 + $0x28] sm:$0xff]  ;;  %s325_s20 = scalar_lea.vmem %s1054_s8, %s810_s17 }
  0x10   : > { %v423_v24 = vpack.c.bf16 %v411_v23, %v410_v22  ;;  %v422_v27 = vpack.c.bf16 %v409_v26, %v408_v25  ;;  %v406_v28 = vld [vmem:[%s1050_s4 + $0x10] sm:$0xff]  ;;  %v407_v29 = vld [vmem:[%s1050_s4 + $0x18] sm:$0xff]  ;;  %v826_v30 = vld [vmem:[%s1049_s3] ss:$0 sm:$0xff] }
  0x11   : > { %v340_v7 = vunpack.c.l.b16 %v330_v5  ;;  %v341_v8 = vunpack.c.l.b16 %v331_v6  ;;  %v421_v31 = vpack.c.bf16 %v407_v29, %v406_v28  ;;  %v404_v32 = vld [vmem:[%s1050_s4] sm:$0xff]  ;;  %v405_v33 = vld [vmem:[%s1050_s4 + $0x8] sm:$0xff]  ;;  %v547_v14 = vld [vmem:[%s1052_s6 + $0x10] sm:$0xff] }
  0x12   : > { %433 = vmatpush.bf16.msra.mxu1 %v426_v15  ;;  %v420_v36 = vpack.c.bf16 %v405_v33, %v404_v32  ;;  %v812_v2 = vld [vmem:[%s315_s10] sm:$0xf]   ;;  %v548_v15 = vld [vmem:[%s1052_s6 + $0x18] sm:$0xff] }
  0x13   : > { %v342_v9 = vpack.c.b16 %v341_v8, %v340_v7  ;;  %v813_v3 = vunpack.c.0.s8 %v812_v2  ;;  %v814_v4 = vunpack.c.1.s8 %v812_v2  ;;  %v827_v13 = vld [vmem:[%s1051_s5] ss:$0 sm:$0xff]  ;;  %v551_v17 = vpack.c.bf16 %v548_v15, %v547_v14 }
  0x14   : > { %v545_v16 = vld [vmem:[%s1052_s6] sm:$0xff] }
  0x15   : > { %790 = vmatmul.msk.bf16.vlgmr.msra.gmra.mxu0 %vm343_vm1, %v342_v9  ;;  %v488_v5 = vcvt.s32.f32 %v813_v3  ;;  %v489_v6 = vcvt.s32.f32 %v814_v4  ;;  %562 = vmatpush.bf16.msra.mxu3 %v551_v17 }
  0x16   : > { %434 = vmatpush.bf16.msra.mxu1 %v425_v18  ;;  %v546_v18 = vld [vmem:[%s1052_s6 + $0x8] sm:$0xff] }
  0x17   : > { %v490_v7 = vpack.c.bf16 %v488_v5, %v488_v5  ;;  %v491_v8 = vpack.c.bf16 %v489_v6, %v489_v6  ;;  %v550_v20 = vpack.c.bf16 %v546_v18, %v545_v16 }
  0x19   : > { %v494_v9 = vunpack.c.l.b16 %v490_v7  ;;  %v495_v10 = vunpack.c.l.b16 %v491_v8  ;;  %563 = vmatpush.bf16.msra.mxu3 %v550_v20  ;;  %v800_v20 = vld [vmem:[%s1052_s6 + $0x30] sm:$0xff] }
  0x1a   : > { %435 = vmatpush.bf16.msra.mxu1 %v424_v21 }
  0x1b   : > { %v987_v12 = vpack.c.b16 %v495_v10, %v494_v9 }
  0x1d   : > { %795 = vmatmul.msk.bf16.vlgmr.msra.gmra.mxu2 %vm497_vm10, %v987_v12 }
  0x1e   : > { %436 = vmatpush.bf16.msra.mxu1 %v423_v24 }
  0x22   : > { %437 = vmatpush.bf16.msra.mxu1 %v422_v27 }
  0x26   : > { %438 = vmatpush.bf16.msra.mxu1 %v421_v31 }
  0x2a   : > { %439 = vmatpush.bf16.msra.mxu1 %v420_v36 }
  0x92   : > { %v360_v34 = vpop.f32.mrf.mxu0 }
  0x93   : > { %v361_v35 = vadd.f32 %v826_v30, %v360_v34 }
  0x95   : > { %v791_v37 = vmul.f32 -1.442695, %v361_v35 }
  0x97   : > { %828 = vpow2.f32 %v791_v37 }
  0x9a   : > { %v362_v38 = vpop.f32.mrf.mxu0 }
  0x9b   : > { %v363_v39 = vadd.f32 %v826_v30, %v362_v38 }
  0x9d   : > { %v829_v40 = vpop.eup %828  ;;  %v792_v41 = vmul.f32 -1.442695, %v363_v39 }
  0x9e   : > { %v371_v42 = vadd.f32 1.0, %v829_v40 }
  0x9f   : > { %830 = vpow2.f32 %v792_v41 }
  0xa0   : > { %832 = vrcp.f32 %v371_v42  ;;  %vm378_vm3 = vweird.f32 %v371_v42  ;;  %v384_v53 = vand.u32 2147483648, %v371_v42  ;;  %v382_v55 = vand.u32 2147483647, %v371_v42 }
  0xa2   : > { %v385_v60 = vor.u32 1.1754944e-38, %v384_v53  ;;  %vm383_vm8 = vcmp.eq.f32.partialorder %v382_v55, 8.507059e+37 }
  0xa5   : > { %v831_v43 = vpop.eup %830 }
  0xa6   : > { %v833_v44 = vpop.eup %832  ;;  %v372_v45 = vadd.f32 1.0, %v831_v43 }
  0xa7   : > { %v374_v46 = vmul.f32 %v833_v44, %v371_v42  ;;  %vm379_vm2 = vweird.f32 %v833_v44 }
  0xa8   : > { %834 = vrcp.f32 %v372_v45  ;;  %v399_v54 = vand.u32 2147483648, %v372_v45  ;;  %v397_v57 = vand.u32 2147483647, %v372_v45  ;;  %vm380_vm5 = vmor %vm378_vm3, %vm379_vm2  ;;  %vm393_vm6 = vweird.f32 %v372_v45 }
  0xa9   : > { %v375_v47 = vsub.f32 1.0, %v374_v46  ;;  %vm552_vm3 = vcmask 261120  }
  0xaa   : > { %v400_v61 = vor.u32 1.1754944e-38, %v399_v54  ;;  %vm398_vm9 = vcmp.eq.f32.partialorder %v397_v57, 8.507059e+37 }
  0xab   : > { %v376_v48 = vmul.f32 %v833_v44, %v375_v47 }
  0xad   : > { %v377_v51 = vadd.f32 %v833_v44, %v376_v48 }
  0xae   : > { %v835_v49 = vpop.eup %834 }
  0xaf   : > { %v389_v50 = vmul.f32 %v835_v49, %v372_v45  ;;  %vm394_vm4 = vweird.f32 %v835_v49  ;;  %v381_v58 = vsel %vm380_vm5, %v833_v44, %v377_v51  ;;  %v510_v51 = vpop.f32.mrf.mxu2 }
  0xb0   : > { %vm395_vm7 = vmor %vm393_vm6, %vm394_vm4  ;;  %v386_v63 = vsel %vm383_vm8, %v385_v60, %v381_v58  ;;  %v869_v60 = vmov 0  }
  0xb1   : > { %v390_v52 = vsub.f32 1.0, %v389_v50  ;;  %825 = vset.pattern.permute.xlu0 %v869_v60 }
  0xb3   : > { %v391_v56 = vmul.f32 %v835_v49, %v390_v52  ;;  %v515_v52 = vadd.f32 1.0, %v510_v51 }
  0xb5   : > { %v392_v59 = vadd.f32 %v835_v49, %v391_v56  ;;  %vm522_vm4 = vweird.f32 %v515_v52 }
  0xb7   : > { %v396_v62 = vsel %vm395_vm7, %v835_v49, %v392_v59  ;;  %v512_v53 = vpop.f32.mrf.mxu2  ;;  %v528_v59 = vand.u32 2147483648, %v515_v52 }
  0xb8   : > { %v401_v0 = vsel %vm398_vm9, %v400_v61, %v396_v62  ;;  %v516_v55 = vadd.f32 1.0, %v512_v53  ;;  %v526_v62 = vand.u32 2147483647, %v515_v52 }
  0xb9   : > { %v403_v1 = vpack.c.bf16 %v401_v0, %v386_v63  ;;  %v529_v0 = vor.u32 1.1754944e-38, %v528_v59 }
  0xba   : > { %vm527_vm7 = vcmp.eq.f32.partialorder %v526_v62, 8.507059e+37  ;;  %v542_v6 = vand.u32 2147483648, %v516_v55  ;;  %vm536_vm8 = vweird.f32 %v516_v55  ;;  %v540_v8 = vand.u32 2147483647, %v516_v55 }
  0xbb   : > { %440 = vmatmul.bf16.vlgmr.msra.gmra.mxu1 %v403_v1 }
  0xbc   : > { %v543_v9 = vor.u32 1.1754944e-38, %v542_v6 }
 0x138   : > { %v441_v19 = vpop.f32.mrf.mxu1 }
 0x139   : > { %v442_v21 = vadd.f32 %v827_v13, %v441_v19 }
 0x13b   : > { %v793_v22 = vmul.f32 -1.442695, %v442_v21  ;;  %v801_v21 = vld [vmem:[%s1052_s6 + $0x38] sm:$0xff] }
 0x13d   : > { %836 = vpow2.f32 %v793_v22  ;;  %v613_v22 = vpack.c.bf16 %v801_v21, %v800_v20 }
 0x13f   : > { %623 = vmatpush.bf16.msrb.mxu2 %v613_v22 }
 0x140   : > { %v443_v23 = vpop.f32.mrf.mxu1 }
 0x141   : > { %v444_v24 = vadd.f32 %v827_v13, %v443_v23  ;;  %v798_v23 = vld [vmem:[%s1052_s6 + $0x20] sm:$0xff] }
 0x143   : > { %v837_v25 = vpop.eup %836  ;;  %v794_v26 = vmul.f32 -1.442695, %v444_v24  ;;  %v799_v24 = vld [vmem:[%s1052_s6 + $0x28] sm:$0xff] }
 0x144   : > { %v452_v27 = vadd.f32 1.0, %v837_v25  ;;  %v612_v25 = vpack.c.bf16 %v799_v24, %v798_v23 }
 0x145   : > { %838 = vpow2.f32 %v794_v26 }
 0x146   : > { %840 = vrcp.f32 %v452_v27  ;;  %vm459_vm12 = vweird.f32 %v452_v27  ;;  %v465_v38 = vand.u32 2147483648, %v452_v27  ;;  %v463_v40 = vand.u32 2147483647, %v452_v27  ;;  %624 = vmatpush.bf16.msrb.mxu2 %v612_v25 }
 0x148   : > { %v466_v45 = vor.u32 1.1754944e-38, %v465_v38  ;;  %vm464_vm1 = vcmp.eq.f32.partialorder %v463_v40, 8.507059e+37 }
 0x14b   : > { %v839_v28 = vpop.eup %838 }
 0x14c   : > { %v841_v29 = vpop.eup %840  ;;  %v453_v30 = vadd.f32 1.0, %v839_v28 }
 0x14d   : > { %v455_v31 = vmul.f32 %v841_v29, %v452_v27  ;;  %vm460_vm11 = vweird.f32 %v841_v29 }
 0x14e   : > { %842 = vrcp.f32 %v453_v30  ;;  %v480_v39 = vand.u32 2147483648, %v453_v30  ;;  %v478_v42 = vand.u32 2147483647, %v453_v30  ;;  %vm461_vm14 = vmor %vm459_vm12, %vm460_vm11  ;;  %vm474_vm15 = vweird.f32 %v453_v30 }
 0x14f   : > { %v456_v32 = vsub.f32 1.0, %v455_v31  ;;  %844 = vrcp.f32 %v515_v52  ;;  %vm541_vm12 = vcmp.eq.f32.partialorder %v540_v8, 8.507059e+37 }
 0x150   : > { %v481_v46 = vor.u32 1.1754944e-38, %v480_v39  ;;  %vm479_vm2 = vcmp.eq.f32.partialorder %v478_v42, 8.507059e+37  ;;  %846 = vrcp.f32 %v516_v55  ;;  %v659_v42 = vld [vmem:[%s1053_s7 + $0x10] sm:$0xff] }
 0x151   : > { %v457_v33 = vmul.f32 %v841_v29, %v456_v32 }
 0x153   : > { %v458_v36 = vadd.f32 %v841_v29, %v457_v33 }
 0x154   : > { %v843_v34 = vpop.eup %842 }
 0x155   : > { %v470_v35 = vmul.f32 %v843_v34, %v453_v30  ;;  %vm475_vm13 = vweird.f32 %v843_v34  ;;  %v462_v43 = vsel %vm461_vm14, %v841_v29, %v458_v36  ;;  %v845_v54 = vpop.eup %844 }
 0x156   : > { %vm476_vm0 = vmor %vm474_vm15, %vm475_vm13  ;;  %v467_v48 = vsel %vm464_vm1, %v466_v45, %v462_v43  ;;  %v518_v56 = vmul.f32 %v845_v54, %v515_v52  ;;  %vm523_vm5 = vweird.f32 %v845_v54  ;;  %v847_v63 = vpop.eup %846  ;;  %v660_v43 = vld [vmem:[%s1053_s7 + $0x18] sm:$0xff]  ;;  %v657_v45 = vld [vmem:[%s1053_s7] sm:$0xff]  ;;  %vm709_vm13 = vcmask 60416  }
 0x157   : > { %v471_v37 = vsub.f32 1.0, %v470_v35  ;;  %vm524_vm6 = vmor %vm522_vm4, %vm523_vm5  ;;  %v532_v2 = vmul.f32 %v847_v63, %v516_v55  ;;  %vm537_vm9 = vweird.f32 %v847_v63 }
 0x158   : > { %v519_v57 = vsub.f32 1.0, %v518_v56  ;;  %vm538_vm11 = vmor %vm536_vm8, %vm537_vm9 }
 0x159   : > { %v472_v41 = vmul.f32 %v843_v34, %v471_v37  ;;  %v533_v4 = vsub.f32 1.0, %v532_v2 }
 0x15a   : > { %v520_v58 = vmul.f32 %v845_v54, %v519_v57 }
 0x15b   : > { %v473_v44 = vadd.f32 %v843_v34, %v472_v41  ;;  %v534_v5 = vmul.f32 %v847_v63, %v533_v4 }
 0x15c   : > { %v521_v61 = vadd.f32 %v845_v54, %v520_v58 }
 0x15d   : > { %v477_v47 = vsel %vm476_vm0, %v843_v34, %v473_v44  ;;  %v535_v7 = vadd.f32 %v847_v63, %v534_v5  ;;  %v663_v44 = vpack.c.bf16 %v660_v43, %v659_v42 }
 0x15e   : > { %v482_v49 = vsel %vm479_vm2, %v481_v46, %v477_v47  ;;  %v525_v1 = vsel %vm524_vm6, %v845_v54, %v521_v61  ;;  %v658_v46 = vld [vmem:[%s1053_s7 + $0x8] sm:$0xff] }
 0x15f   : > { %v549_v50 = vpack.c.bf16 %v482_v49, %v467_v48  ;;  %v530_v3 = vsel %vm527_vm7, %v529_v0, %v525_v1  ;;  %v539_v10 = vsel %vm538_vm11, %v847_v63, %v535_v7  ;;  %v662_v47 = vpack.c.bf16 %v658_v46, %v657_v45 }
 0x160   : > { %594 = vperm.xlu0 %825, %v530_v3   ;;  %v544_v11 = vsel %vm541_vm12, %v543_v9, %v539_v10 }
 0x161   : > { %796 = vmatmul.msk.bf16.vlgmr.msra.gmra.mxu3 %vm552_vm3, %v549_v50 }
 0x168   : > { %599 = vperm.xlu0 %825, %v544_v11  }
 0x1d2   : > { %v595_v26 = vpop.permute.xlu0 %594 }
 0x1da   : > { %v600_v29 = vpop.permute.xlu0 %599 }
 0x1e4   : > { %v565_v13 = vpop.f32.mrf.mxu3 }
 0x1e5   : > { %v570_v14 = vpack.c.bf16 %v565_v13, %v565_v13 }
 0x1e7   : > { %v574_v17 = vunpack.c.l.b16 %v570_v14 }
 0x1ec   : > { %v567_v15 = vpop.f32.mrf.mxu3 }
 0x1ed   : > { %v571_v16 = vpack.c.bf16 %v567_v15, %v567_v15 }
 0x1ef   : > { %v575_v18 = vunpack.c.l.b16 %v571_v16 }
 0x1f1   : > { %v576_v19 = vpack.c.b16 %v575_v18, %v574_v17 }
 0x1f3   : > { %585 = vmatpush.bf16.msrb.mxu0 %v576_v19 }
 0x1f6   : > { %797 = vmatmul.msk.bf16.vlgmr.msrb.gmra.mxu0 %vm497_vm10, %v987_v12 }
 0x1f7   : > { %673 = vmatpush.bf16.msra.mxu0 %v663_v44 }
 0x1fb   : > { %674 = vmatpush.bf16.msra.mxu0 %v662_v47 }
 0x273   : > { %v587_v27 = vpop.f32.mrf.mxu0 }
 0x274   : > { %v602_v28 = vmul.f32 %v595_v26, %v587_v27 }
 0x276   : > { %848 = vtanh.f32 %v602_v28 }
 0x27b   : > { %v589_v30 = vpop.f32.mrf.mxu0 }
 0x27c   : > { %v603_v31 = vmul.f32 %v600_v29, %v589_v30  ;;  %v849_v32 = vpop.eup %848 }
 0x27e   : > { %850 = vtanh.f32 %v603_v31 }
 0x284   : > { %v851_v33 = vpop.eup %850 }
 0x285   : > { %v611_v34 = vpack.c.bf16 %v851_v33, %v849_v32 }
 0x287   : > { %802 = vmatmul.msk.bf16.vlgmr.msrb.gmra.mxu2 %vm552_vm3, %v611_v34 }
 0x30a   : > { %v626_v35 = vpop.f32.mrf.mxu2 }
 0x30b   : > { %v631_v36 = vpack.c.bf16 %v626_v35, %v626_v35 }
 0x30d   : > { %v635_v39 = vunpack.c.l.b16 %v631_v36 }
 0x312   : > { %v628_v37 = vpop.f32.mrf.mxu2 }
 0x313   : > { %v632_v38 = vpack.c.bf16 %v628_v37, %v628_v37 }
 0x315   : > { %v636_v40 = vunpack.c.l.b16 %v632_v38 }
 0x317   : > { %v637_v41 = vpack.c.b16 %v636_v40, %v635_v39 }
 0x319   : > { %646 = vmatpush.bf16.msrb.mxu3 %v637_v41 }
 0x31c   : > { %803 = vmatmul.msk.bf16.vlgmr.msrb.gmra.mxu3 %vm497_vm10, %v987_v12 }
 0x39f   : > { %v648_v48 = vpop.f32.mrf.mxu3 }
 0x3a0   : > { %v653_v49 = vmul.f32 %v648_v48, %v595_v26 }
 0x3a2   : > { %852 = vtanh.f32 %v653_v49 }
 0x3a7   : > { %v650_v50 = vpop.f32.mrf.mxu3 }
 0x3a8   : > { %v654_v51 = vmul.f32 %v650_v50, %v600_v29  ;;  %v853_v52 = vpop.eup %852 }
 0x3aa   : > { %854 = vtanh.f32 %v654_v51 }
 0x3b0   : > { %v855_v53 = vpop.eup %854 }
 0x3b1   : > { %v661_v54 = vpack.c.bf16 %v855_v53, %v853_v52 }
 0x3b3   : > { %804 = vmatmul.msk.bf16.vlgmr.msra.gmra.mxu0 %vm552_vm3, %v661_v54 }
 0x430   : > { %v676_v55 = vpop.f32.mrf.mxu0 }
 0x431   : > { %v681_v56 = vpack.c.bf16 %v676_v55, %v676_v55 }
 0x433   : > { %v685_v59 = vunpack.c.l.b16 %v681_v56 }
 0x438   : > { %v678_v57 = vpop.f32.mrf.mxu0 }
 0x439   : > { %v682_v58 = vpack.c.bf16 %v678_v57, %v678_v57 }
 0x43b   : > { %v686_v60 = vunpack.c.l.b16 %v682_v58 }
 0x43d   : > { %v687_v61 = vpack.c.b16 %v686_v60, %v685_v59 }
 0x43f   : > { %696 = vmatpush.bf16.msra.mxu2 %v687_v61 }
 0x442   : > { %805 = vmatmul.msk.bf16.vlgmr.msra.gmra.mxu2 %vm497_vm10, %v987_v12 }
 0x4c5   : > { %v698_v62 = vpop.f32.mrf.mxu2 }
 0x4c6   : > { %v703_v63 = vmul.f32 %v698_v62, %v595_v26 }
 0x4c8   : > { %856 = vtanh.f32 %v703_v63 }
 0x4cd   : > { %v700_v0 = vpop.f32.mrf.mxu2 }
 0x4ce   : > { %v857_v1 = vpop.eup %856  ;;  %v704_v2 = vmul.f32 %v700_v0, %v600_v29 }
 0x4cf   : > { %v707_v3 = vpack.c.bf16 %v857_v1, %v857_v1 }
 0x4d0   : > { %858 = vtanh.f32 %v704_v2 }
 0x4d1   : > { %710 = vst.msk [vmem:[%s325_s20] sm:$0xf] %vm709_vm13, %v707_v3 }
 0x4d6   : > { %v859_v4 = vpop.eup %858 }
 0x4d7   : > { %v708_v5 = vpack.c.bf16 %v859_v4, %v859_v4 }
 0x4d9   : > { %711 = vst.msk [vmem:[%s325_s20 + $0x4] sm:$0xf] %vm709_vm13, %v708_v5 }
 0x4da PF: > { %s18_s27 = sadd.s32 1, %s866_s27  }
 0x4db   : > { %p15_p4 = scmp.ge.s32.totalorder %s18_s27, 4  }
 0x4dd   :  { %17 = sbr.rel (!%p15_p4) target bundleno = 1 (0x1), region = 86 }

</bundles_post_ra>
